<compile_context>
chip_gen: v7x
topology: tpu7x:2x2x1
jax: 0.10.0
libtpu: 0.0.40
codegen_flags: <defaults>
</compile_context>

<pallas_src>
import functools
import math

import numpy as np
import jax
import jax.numpy as jnp
from jax import lax
from jax.experimental import pallas as pl
from jax.experimental.pallas import tpu as pltpu


def _round_up(v: int, m: int) -> int:
    return ((v + m - 1) // m) * m


def _physical_vmem_bytes() -> int:
    """Per-core VMEM capacity; conservative 64 MiB fallback (v7x per-TC)."""
    try:
        return int(pltpu.get_tpu_info().vmem_capacity_bytes)
    except Exception:
        return 64 << 20


def _vmem_footprint_bytes(n: int, kp2: int, tl: int, reps: int,
                          nbuf_in: int = 2, nbuf_out: int = 2) -> int:
    """Estimated VMEM footprint for one grid step (f32 everywhere)."""
    f32 = 4
    const = f32 * (2 * kp2 * n              # Cf + Ainv
                   + 2 * kp2 * tl           # Wa + Wb (tiled filter)
                   + tl * reps + reps * tl  # S (reduce) + Bcast
                   + 2 * 8 * tl)            # gamma / beta (sublane padded)
    blocks = f32 * n * tl * (nbuf_in + nbuf_out)       # pipelined x / out slabs
    temps = f32 * tl * (3 * kp2 + 6 * n)               # y, y_swap, z + (N,TL) temps
    return const + blocks + temps


def _plan_tiles(total: int, n: int, kp2: int, d: int, vmem_phys: int):
    """Pick (TL, n_tiles, padded_total) for the folded B*D lane axis.

    TL is always a multiple of lcm(D, 128) (whole LayerNorm groups, lane-dense
    128-multiple stores).  On 2-TC / 64 MiB chips we force >= 2 tiles when the
    axis is big enough so both TensorCores get work."""
    step = d * 128 // math.gcd(d, 128)                 # lcm(D, 128)
    units = max(1, -(-total // step))                  # ceil(total / step)
    two_core = vmem_phys <= (96 << 20)                 # v7x-like: 64 MiB / TC, 2 TCs
    cap = 1024 if two_core else 4096                   # lane-tile cap
    cap_units = max(1, cap // step)
    if two_core and units >= 2:
        upt = min(cap_units, max(1, units // 2))       # >= 2 tiles for 2 TCs
    else:
        upt = min(cap_units, units)
    budget = int(0.85 * vmem_phys)
    while upt > 1 and 1.25 * _vmem_footprint_bytes(n, kp2, upt * step, (upt * step) // d) > budget:
        upt -= 1
    tl = upt * step
    n_tiles = -(-units // upt)                         # ceil
    return tl, n_tiles, n_tiles * tl


@functools.lru_cache(maxsize=None)
def _dft_matrices_np(n: int, kp: int):
    """Stacked real matrices for ortho rfft / irfft along a length-n axis.

    cf   (2*kp, n): [Cr; Ci]  so  [Yr; Yi] = Cf @ x
    ainv (n, 2*kp): [A | Bm]  so  out = Ainv @ [Zr; Zi]
    Rows/cols beyond K = n//2+1 are zero (padded frequency bins contribute nothing)."""
    K = n // 2 + 1
    k = np.arange(K, dtype=np.float64)[:, None]
    m = np.arange(n, dtype=np.float64)[None, :]
    theta = 2.0 * np.pi * k * m / n
    scale = 1.0 / np.sqrt(n)
    cr = np.cos(theta) * scale
    ci = -np.sin(theta) * scale
    c = np.full((K,), 2.0)
    c[0] = 1.0
    if n % 2 == 0:
        c[-1] = 1.0                                    # Nyquist counted once
    a = (c[None, :] * np.cos(theta.T)) * scale
    bm = -(c[None, :] * np.sin(theta.T)) * scale

    cf = np.zeros((2 * kp, n), dtype=np.float32)
    cf[:K] = cr
    cf[kp:kp + K] = ci
    ainv = np.zeros((n, 2 * kp), dtype=np.float32)
    ainv[:, :K] = a
    ainv[:, kp:kp + K] = bm
    return cf, ainv


@functools.lru_cache(maxsize=None)
def _ln_reduce_matrices_np(d: int, reps: int):
    """S (reps*d, reps): column g averages group g (1/d).  Bcast (reps, reps*d): ones
    on group g's columns.  u = (h @ S) @ Bcast broadcasts each group mean back."""
    eye = np.eye(reps, dtype=np.float32)
    s = np.kron(eye, np.full((d, 1), 1.0 / d, dtype=np.float32))
    b = np.kron(eye, np.ones((1, d), dtype=np.float32))
    return s, b


def _filter_kernel(x_ref, cf_ref, ainv_ref, wa_ref, wb_ref,
                   sred_ref, bcast_ref, gamma_ref, beta_ref, o_ref):
    kp = wa_ref.shape[0] // 2                          # padded #freq bins (static)
    x = x_ref[...]                                     # (N, TL) lane-dense slab

    # Forward rfft (ortho), stacked: Y = [Yr; Yi] = Cf @ x
    y = jnp.dot(cf_ref[...], x, preferred_element_type=jnp.float32)       # (2Kp, TL)

    # Complex filter multiply in stacked form:
    #   [Zr; Zi] = Y * [Wr; Wr] + swap_halves(Y) * [-Wi; Wi]
    y_swap = pltpu.roll(y, shift=kp, axis=0)           # [Yi; Yr] via sublane roll (XLU)
    z = y * wa_ref[...] + y_swap * wb_ref[...]

    # Inverse rfft (ortho): out = Ainv @ [Zr; Zi]
    yt = jnp.dot(ainv_ref[...], z, preferred_element_type=jnp.float32)    # (N, TL)

    # TODO(synk): Dropout(p=0.5) is identity in eval mode; training-mode RNG mask
    #             (pltpu.prng_seed / prng_random_bits) not reproduced.
    h = yt + x

    # LayerNorm over each D-group of the folded lane axis, eps=1e-12, biased variance.
    # Group reduce (S: TL x reps) then broadcast (Bcast: reps x TL) — O(N*TL*reps) MXU
    # work instead of the previous O(N*TL^2) block-diagonal matmul.
    u = jnp.dot(jnp.dot(h, sred_ref[...], preferred_element_type=jnp.float32),
                bcast_ref[...], preferred_element_type=jnp.float32)
    hc = h - u
    var = jnp.dot(jnp.dot(hc * hc, sred_ref[...], preferred_element_type=jnp.float32),
                  bcast_ref[...], preferred_element_type=jnp.float32)
    hn = hc * lax.rsqrt(var + 1e-12)
    o_ref[...] = gamma_ref[...] * hn + beta_ref[...]


def _filter_layer_impl(x, flt, ln_weight, ln_bias):
    """x: (B, N, D) float32; flt: (1, N//2+1, D, 2); ln_weight/ln_bias: (D,)."""
    B, N, D = x.shape
    K = N // 2 + 1
    Kp = _round_up(K, 8)                               # sublane-aligned frequency count
    total = B * D                                      # folded lane axis

    vmem_phys = _physical_vmem_bytes()
    TL, n_tiles, total_p = _plan_tiles(total, N, 2 * Kp, D, vmem_phys)
    reps = TL // D                                     # LN groups per lane tile

    cf_np, ainv_np = _dft_matrices_np(N, Kp)           # cached host constants
    s_np, b_np = _ln_reduce_matrices_np(D, reps)
    cf, ainv = jnp.asarray(cf_np), jnp.asarray(ainv_np)
    sred, bcast = jnp.asarray(s_np), jnp.asarray(b_np)

    # Zero-padded filter, stacked and tiled across the D-period of one lane tile.
    # Tile boundaries are D-aligned, so every grid tile sees the same constants.
    wr = jnp.zeros((Kp, D), jnp.float32).at[:K].set(flt[0, :, :, 0].astype(jnp.float32))
    wi = jnp.zeros((Kp, D), jnp.float32).at[:K].set(flt[0, :, :, 1].astype(jnp.float32))
    wa = jnp.tile(jnp.concatenate([wr, wr], axis=0), (1, reps))       # (2Kp, TL)
    wb = jnp.tile(jnp.concatenate([-wi, wi], axis=0), (1, reps))      # (2Kp, TL)
    gamma = jnp.tile(ln_weight.reshape(1, D).astype(jnp.float32), (1, reps))  # (1, TL)
    beta = jnp.tile(ln_bias.reshape(1, D).astype(jnp.float32), (1, reps))     # (1, TL)

    # Fold batch into the lane axis and zero-pad to the tiled width (padding forms
    # whole zero D-groups, so it never contaminates real LayerNorm groups).
    x2 = jnp.transpose(x, (1, 0, 2)).reshape(N, total).astype(jnp.float32)
    if total_p > total:
        x2 = jnp.pad(x2, ((0, 0), (0, total_p - total)))

    # VMEM limit from the real footprint (+25% headroom), capped at 85% of physical.
    footprint = _vmem_footprint_bytes(N, 2 * Kp, TL, reps)
    vmem_limit = int(min(max(1.25 * footprint, 16 << 20), 0.85 * vmem_phys))

    # Whole-array VMEM operands: copied once, not part of the double-buffered pipeline.
    vmem_const = pl.BlockSpec(memory_space=pltpu.MemorySpace.VMEM)

    y2 = pl.pallas_call(
        _filter_kernel,
        out_shape=jax.ShapeDtypeStruct((N, total_p), jnp.float32),
        grid=(n_tiles,),
        in_specs=[
            pl.BlockSpec((N, TL), lambda j: (0, j)),   # x slab (lane-dense)
            vmem_const,                                # Cf
            vmem_const,                                # Ainv
            vmem_const,                                # Wa
            vmem_const,                                # Wb
            vmem_const,                                # S   (LN group reduce)
            vmem_const,                                # Bcast (LN group broadcast)
            vmem_const,                                # gamma
            vmem_const,                                # beta
        ],
        out_specs=pl.BlockSpec((N, TL), lambda j: (0, j)),
        compiler_params=pltpu.CompilerParams(
            dimension_semantics=("parallel",),
            vmem_limit_bytes=vmem_limit,
        ),
    )(x2, cf, ainv, wa, wb, sred, bcast, gamma, beta)

    # Drop lane padding and unfold back to (B, N, D).
    y2 = y2[:, :total]
    return jnp.transpose(y2.reshape(N, B, D), (1, 0, 2))


filter_layer = jax.jit(_filter_layer_impl)


def _reference(x, flt, ln_weight, ln_bias):
    """Plain-JAX reference mirroring the PyTorch forward (eval mode)."""
    n = x.shape[1]
    y = jnp.fft.rfft(x, axis=1, norm="ortho")
    kernel = flt[..., 0] + 1j * flt[..., 1]            # (1, K, D)
    y = y * kernel
    y = jnp.fft.irfft(y, n=n, axis=1, norm="ortho")
    h = y + x
    u = jnp.mean(h, axis=-1, keepdims=True)
    s = jnp.mean((h - u) ** 2, axis=-1, keepdims=True)
    hn = (h - u) / jnp.sqrt(s + 1e-12)
    return ln_weight * hn + ln_bias


if __name__ == "__main__":
    B, N, D = 2, 8, 32                                 # batch, max_len, d_model
    K = N // 2 + 1

    key = jax.random.PRNGKey(0)
    kx, kf = jax.random.split(key)
    x = jax.random.normal(kx, (B, N, D), dtype=jnp.float32)
    # Deterministic parameter init matching the module __init__ (randn * 0.02).
    flt = jax.random.normal(kf, (1, K, D, 2), dtype=jnp.float32) * 0.02
    ln_weight = jnp.ones((D,), dtype=jnp.float32)
    ln_bias = jnp.zeros((D,), dtype=jnp.float32)

    out = jax.block_until_ready(filter_layer(x, flt, ln_weight, ln_bias))

    ref = _reference(x, flt, ln_weight, ln_bias)
    np.testing.assert_allclose(np.asarray(out), np.asarray(ref), atol=1e-4, rtol=1e-4)

    print("KERNEL_OK")
</pallas_src>

<mosaic_0001>
module attributes {stable_mosaic.version = 11 : i64} {
  func.func @_filter_kernel(%arg0: i32, %arg1: memref<8x128xf32, #tpu.memory_space<vmem>>, %arg2: memref<16x8xf32, #tpu.memory_space<vmem>>, %arg3: memref<8x16xf32, #tpu.memory_space<vmem>>, %arg4: memref<16x128xf32, #tpu.memory_space<vmem>>, %arg5: memref<16x128xf32, #tpu.memory_space<vmem>>, %arg6: memref<128x4xf32, #tpu.memory_space<vmem>>, %arg7: memref<4x128xf32, #tpu.memory_space<vmem>>, %arg8: memref<1x128xf32, #tpu.memory_space<vmem>>, %arg9: memref<1x128xf32, #tpu.memory_space<vmem>>, %arg10: memref<8x128xf32, #tpu.memory_space<vmem>>) attributes {dimension_semantics = [#tpu.dimension_semantics<parallel>], iteration_bounds = array<i64: 1>, scalar_prefetch = 0 : i64, scratch_operands = 0 : i64, tpu.core_type = #tpu.core_type<tc>, window_params = [{transform_indices = @transform_0, window_bounds = array<i64: 8, 128>}, {pipeline_mode = #tpu.pipeline_mode<synchronous>, transform_indices = @transform_1, window_bounds = array<i64: 16, 8>}, {pipeline_mode = #tpu.pipeline_mode<synchronous>, transform_indices = @transform_2, window_bounds = array<i64: 8, 16>}, {pipeline_mode = #tpu.pipeline_mode<synchronous>, transform_indices = @transform_3, window_bounds = array<i64: 16, 128>}, {pipeline_mode = #tpu.pipeline_mode<synchronous>, transform_indices = @transform_4, window_bounds = array<i64: 16, 128>}, {pipeline_mode = #tpu.pipeline_mode<synchronous>, transform_indices = @transform_5, window_bounds = array<i64: 128, 4>}, {pipeline_mode = #tpu.pipeline_mode<synchronous>, transform_indices = @transform_6, window_bounds = array<i64: 4, 128>}, {pipeline_mode = #tpu.pipeline_mode<synchronous>, transform_indices = @transform_7, window_bounds = array<i64: 1, 128>}, {pipeline_mode = #tpu.pipeline_mode<synchronous>, transform_indices = @transform_8, window_bounds = array<i64: 1, 128>}, {transform_indices = @transform_9, window_bounds = array<i64: 8, 128>}]} {
    %c0 = arith.constant 0 : index
    %c0_0 = arith.constant 0 : index
    %0 = vector.load %arg1[%c0, %c0_0] : memref<8x128xf32, #tpu.memory_space<vmem>>, vector<8x128xf32>
    %c0_1 = arith.constant 0 : index
    %c0_2 = arith.constant 0 : index
    %1 = vector.load %arg2[%c0_1, %c0_2] : memref<16x8xf32, #tpu.memory_space<vmem>>, vector<16x8xf32>
    %cst = arith.constant dense<0.000000e+00> : vector<16x128xf32>
    %2 = tpu.matmul %1, %0, %cst {dimension_numbers = #tpu.dot_dimension_numbers<[1], [0], [0], [1], [0, 0, 1, 1], [], []>} : vector<16x8xf32>, vector<8x128xf32>, vector<16x128xf32> -> vector<16x128xf32>
    %c8_i32 = arith.constant 8 : i32
    %3 = tpu.dynamic_rotate %2 by %c8_i32 dim 0 : vector<16x128xf32>, i32 -> vector<16x128xf32>
    %c0_3 = arith.constant 0 : index
    %c0_4 = arith.constant 0 : index
    %4 = vector.load %arg4[%c0_3, %c0_4] : memref<16x128xf32, #tpu.memory_space<vmem>>, vector<16x128xf32>
    %5 = arith.mulf %2, %4 : vector<16x128xf32>
    %c0_5 = arith.constant 0 : index
    %c0_6 = arith.constant 0 : index
    %6 = vector.load %arg5[%c0_5, %c0_6] : memref<16x128xf32, #tpu.memory_space<vmem>>, vector<16x128xf32>
    %7 = arith.mulf %3, %6 : vector<16x128xf32>
    %8 = arith.addf %5, %7 : vector<16x128xf32>
    %c0_7 = arith.constant 0 : index
    %c0_8 = arith.constant 0 : index
    %9 = vector.load %arg3[%c0_7, %c0_8] : memref<8x16xf32, #tpu.memory_space<vmem>>, vector<8x16xf32>
    %cst_9 = arith.constant dense<0.000000e+00> : vector<8x128xf32>
    %10 = tpu.matmul %9, %8, %cst_9 {dimension_numbers = #tpu.dot_dimension_numbers<[1], [0], [0], [1], [0, 0, 1, 1], [], []>} : vector<8x16xf32>, vector<16x128xf32>, vector<8x128xf32> -> vector<8x128xf32>
    %11 = arith.addf %10, %0 : vector<8x128xf32>
    %c0_10 = arith.constant 0 : index
    %c0_11 = arith.constant 0 : index
    %12 = vector.load %arg6[%c0_10, %c0_11] : memref<128x4xf32, #tpu.memory_space<vmem>>, vector<128x4xf32>
    %cst_12 = arith.constant dense<0.000000e+00> : vector<8x4xf32>
    %13 = tpu.matmul %11, %12, %cst_12 {dimension_numbers = #tpu.dot_dimension_numbers<[1], [0], [0], [1], [0, 0, 1, 1], [], []>} : vector<8x128xf32>, vector<128x4xf32>, vector<8x4xf32> -> vector<8x4xf32>
    %c0_13 = arith.constant 0 : index
    %c0_14 = arith.constant 0 : index
    %14 = vector.load %arg7[%c0_13, %c0_14] : memref<4x128xf32, #tpu.memory_space<vmem>>, vector<4x128xf32>
    %cst_15 = arith.constant dense<0.000000e+00> : vector<8x128xf32>
    %15 = tpu.matmul %13, %14, %cst_15 {dimension_numbers = #tpu.dot_dimension_numbers<[1], [0], [0], [1], [0, 0, 1, 1], [], []>} : vector<8x4xf32>, vector<4x128xf32>, vector<8x128xf32> -> vector<8x128xf32>
    %16 = arith.subf %11, %15 : vector<8x128xf32>
    %17 = arith.mulf %16, %16 : vector<8x128xf32>
    %c0_16 = arith.constant 0 : index
    %c0_17 = arith.constant 0 : index
    %18 = vector.load %arg6[%c0_16, %c0_17] : memref<128x4xf32, #tpu.memory_space<vmem>>, vector<128x4xf32>
    %cst_18 = arith.constant dense<0.000000e+00> : vector<8x4xf32>
    %19 = tpu.matmul %17, %18, %cst_18 {dimension_numbers = #tpu.dot_dimension_numbers<[1], [0], [0], [1], [0, 0, 1, 1], [], []>} : vector<8x128xf32>, vector<128x4xf32>, vector<8x4xf32> -> vector<8x4xf32>
    %c0_19 = arith.constant 0 : index
    %c0_20 = arith.constant 0 : index
    %20 = vector.load %arg7[%c0_19, %c0_20] : memref<4x128xf32, #tpu.memory_space<vmem>>, vector<4x128xf32>
    %cst_21 = arith.constant dense<0.000000e+00> : vector<8x128xf32>
    %21 = tpu.matmul %19, %20, %cst_21 {dimension_numbers = #tpu.dot_dimension_numbers<[1], [0], [0], [1], [0, 0, 1, 1], [], []>} : vector<8x4xf32>, vector<4x128xf32>, vector<8x128xf32> -> vector<8x128xf32>
    %cst_22 = arith.constant 9.99999996E-13 : f32
    %22 = vector.broadcast %cst_22 : f32 to vector<8x128xf32>
    %23 = arith.addf %21, %22 : vector<8x128xf32>
    %24 = math.rsqrt %23 : vector<8x128xf32>
    %25 = arith.mulf %16, %24 : vector<8x128xf32>
    %c0_23 = arith.constant 0 : index
    %c0_24 = arith.constant 0 : index
    %26 = vector.load %arg8[%c0_23, %c0_24] : memref<1x128xf32, #tpu.memory_space<vmem>>, vector<1x128xf32>
    %27 = vector.broadcast %26 : vector<1x128xf32> to vector<8x128xf32>
    %28 = arith.mulf %27, %25 : vector<8x128xf32>
    %c0_25 = arith.constant 0 : index
    %c0_26 = arith.constant 0 : index
    %29 = vector.load %arg9[%c0_25, %c0_26] : memref<1x128xf32, #tpu.memory_space<vmem>>, vector<1x128xf32>
    %30 = vector.broadcast %29 : vector<1x128xf32> to vector<8x128xf32>
    %31 = arith.addf %28, %30 : vector<8x128xf32>
    %c0_27 = arith.constant 0 : index
    %c0_28 = arith.constant 0 : index
    %32 = vector.load %arg10[%c0_27, %c0_28] : memref<8x128xf32, #tpu.memory_space<vmem>>, vector<8x128xf32>
    tpu.vector_store %arg10[%c0_27, %c0_28], %31 {strides = array<i32>} : memref<8x128xf32, #tpu.memory_space<vmem>>, vector<8x128xf32>,
    return
  }
  func.func @transform_0(%arg0: i32) -> (i32, i32) {
    %c0_i32 = arith.constant 0 : i32
    %c0_i32_0 = arith.constant 0 : i32
    return %c0_i32, %arg0 : i32, i32
  }
  func.func @transform_1(%arg0: i32) -> (i32, i32) {
    %c0_i32 = arith.constant 0 : i32
    %c0_i32_0 = arith.constant 0 : i32
    %c0_i32_1 = arith.constant 0 : i32
    return %c0_i32, %c0_i32_0 : i32, i32
  }
  func.func @transform_2(%arg0: i32) -> (i32, i32) {
    %c0_i32 = arith.constant 0 : i32
    %c0_i32_0 = arith.constant 0 : i32
    %c0_i32_1 = arith.constant 0 : i32
    return %c0_i32, %c0_i32_0 : i32, i32
  }
  func.func @transform_3(%arg0: i32) -> (i32, i32) {
    %c0_i32 = arith.constant 0 : i32
    %c0_i32_0 = arith.constant 0 : i32
    %c0_i32_1 = arith.constant 0 : i32
    return %c0_i32, %c0_i32_0 : i32, i32
  }
  func.func @transform_4(%arg0: i32) -> (i32, i32) {
    %c0_i32 = arith.constant 0 : i32
    %c0_i32_0 = arith.constant 0 : i32
    %c0_i32_1 = arith.constant 0 : i32
    return %c0_i32, %c0_i32_0 : i32, i32
  }
  func.func @transform_5(%arg0: i32) -> (i32, i32) {
    %c0_i32 = arith.constant 0 : i32
    %c0_i32_0 = arith.constant 0 : i32
    %c0_i32_1 = arith.constant 0 : i32
    return %c0_i32, %c0_i32_0 : i32, i32
  }
  func.func @transform_6(%arg0: i32) -> (i32, i32) {
    %c0_i32 = arith.constant 0 : i32
    %c0_i32_0 = arith.constant 0 : i32
    %c0_i32_1 = arith.constant 0 : i32
    return %c0_i32, %c0_i32_0 : i32, i32
  }
  func.func @transform_7(%arg0: i32) -> (i32, i32) {
    %c0_i32 = arith.constant 0 : i32
    %c0_i32_0 = arith.constant 0 : i32
    %c0_i32_1 = arith.constant 0 : i32
    return %c0_i32, %c0_i32_0 : i32, i32
  }
  func.func @transform_8(%arg0: i32) -> (i32, i32) {
    %c0_i32 = arith.constant 0 : i32
    %c0_i32_0 = arith.constant 0 : i32
    %c0_i32_1 = arith.constant 0 : i32
    return %c0_i32, %c0_i32_0 : i32, i32
  }
  func.func @transform_9(%arg0: i32) -> (i32, i32) {
    %c0_i32 = arith.constant 0 : i32
    %c0_i32_0 = arith.constant 0 : i32
    return %c0_i32, %arg0 : i32, i32
  }
}

</mosaic_0001>

<bundles_post_ra>
// kernel: tile.27
= control target key start
LH: loop header
LB: loop body
LE: loop exit
PB: predicated region body
PF: predicated region fallthrough
CT: control target
= control target key end

     0   :  { %vm82_vm0 = vcmask 1047556   ;;  %vm84_vm1 = vcmask 261120   ;;  %s195_s9 = smov 96   ;;  %s196_s14 = smov 32   ;;  %vm103_vm2 = vcmask 1048320   ;;  %vm124_vm3 = vcmask 785920   ;;  %s289_s0 = inlined_call_operand.vmem [shape: f32[16,4,32], index: 0, kind: input, shape index: {}]   ;;  %s290_s1 = inlined_call_operand.vmem [shape: f32[16,128], index: 1, kind: output, shape index: {}]  }
   0x1   :  { %v180_v0 = vld [vmem:[%s289_s0 + $0x1c] sm:$0xf]  ;;  %v181_v1 = vld [vmem:[%s289_s0 + $0x18] sm:$0xf]  ;;  %v182_v2 = vld [vmem:[%s289_s0 + $0x14] sm:$0xf] }
   0x2   :  { %48 = vst [vmem:[#allocation0 + $0x38] sm:$0xf] %v180_v0  ;;  %53 = vst [vmem:[#allocation0 + $0x30] sm:$0xf] %v181_v1  ;;  %v183_v3 = vld [vmem:[%s289_s0 + $0x10] sm:$0xf] }
   0x3   :  { %58 = vst [vmem:[#allocation0 + $0x28] sm:$0xf] %v182_v2  ;;  %v184_v4 = vld [vmem:[%s289_s0 + $0xc] sm:$0xf]  ;;  %v185_v5 = vld [vmem:[%s289_s0 + $0x8] sm:$0xf] }
   0x4   :  { %63 = vst [vmem:[#allocation0 + $0x20] sm:$0xf] %v183_v3  ;;  %68 = vst [vmem:[#allocation0 + $0x18] sm:$0xf] %v184_v4  ;;  %v186_v6 = vld [vmem:[%s289_s0 + $0x4] sm:$0xf] }
   0x5   :  { %73 = vst [vmem:[#allocation0 + $0x10] sm:$0xf] %v185_v5  ;;  %v78_v7 = vld [vmem:[%s289_s0] sm:$0xf]  ;;  %77 = vst [vmem:[#allocation0 + $0x8] sm:$0xf] %v186_v6 }
   0x6   :  { %79 = vst [vmem:[#allocation0] sm:$0xf] %v78_v7  ;;  %v172_v8 = vld [vmem:[%s289_s0 + $0x3c] sm:$0xf]  ;;  %v173_v9 = vld [vmem:[%s289_s0 + $0x38] sm:$0xf] }
   0x7   :  { %8 = vst [vmem:[#allocation0 + $0x78] sm:$0xf] %v172_v8  ;;  %13 = vst [vmem:[#allocation0 + $0x70] sm:$0xf] %v173_v9  ;;  %v174_v10 = vld [vmem:[%s289_s0 + $0x34] sm:$0xf] }
   0x8   :  { %v175_v11 = vld [vmem:[%s289_s0 + $0x30] sm:$0xf]  ;;  %v176_v12 = vld [vmem:[%s289_s0 + $0x2c] sm:$0xf]  ;;  %18 = vst [vmem:[#allocation0 + $0x68] sm:$0xf] %v174_v10 }
   0x9   :  { %23 = vst [vmem:[#allocation0 + $0x60] sm:$0xf] %v175_v11  ;;  %28 = vst [vmem:[#allocation0 + $0x58] sm:$0xf] %v176_v12  ;;  %v177_v13 = vld [vmem:[%s289_s0 + $0x28] sm:$0xf] }
   0xa   :  { %v178_v14 = vld [vmem:[%s289_s0 + $0x24] sm:$0xf]  ;;  %v179_v15 = vld [vmem:[%s289_s0 + $0x20] sm:$0xf]  ;;  %33 = vst [vmem:[#allocation0 + $0x50] sm:$0xf] %v177_v13 }
   0xb   :  { %38 = vst [vmem:[#allocation0 + $0x48] sm:$0xf] %v178_v14  ;;  %43 = vst [vmem:[#allocation0 + $0x40] sm:$0xf] %v179_v15  ;;  %s194_s0 = smov 64   ;;  %vm145_vm4 = vcmask 523520  }
   0xc   :  { %v119_v16 = vld [vmem:[#allocation0 + $0x2] ss:$8 sm:$0xf0]   ;;  %v98_v17 = vld [vmem:[#allocation0 + $0x3] ss:$8 sm:$0xf0]  }
   0xd   :  { %v117_v18 = vld [vmem:[#allocation0 + $0x2] ss:$8 sm:$0xf]   ;;  %v96_v19 = vld [vmem:[#allocation0 + $0x3] ss:$8 sm:$0xf]  }
   0xe   :  { %v121_v20 = vsel %vm82_vm0, %v119_v16, %v117_v18  ;;  %v100_v21 = vsel %vm82_vm0, %v98_v17, %v96_v19  ;;  %v138_v24 = vld [vmem:[#allocation0 + $0x1] ss:$8 sm:$0xf]   ;;  %v80_v32 = vld [vmem:[#allocation0] ss:$8 sm:$0xf]  }
   0xf   :  { %122 = vrot.lane.b32.xlu1 %v121_v20, %s194_s0  ;;  %101 = vrot.lane.b32.xlu0 %v100_v21, %s195_s9  ;;  %v140_v25 = vld [vmem:[#allocation0 + $0x1] ss:$8 sm:$0xf0]   ;;  %v81_v33 = vld [vmem:[#allocation0] ss:$8 sm:$0xf0]  }
  0x10   :  { %v129_v22 = vld [vmem:[#allocation0 + $0x42] ss:$8 sm:$0xf0]   ;;  %v108_v23 = vld [vmem:[#allocation0 + $0x43] ss:$8 sm:$0xf0]   ;;  %v83_v34 = vsel %vm82_vm0, %v81_v33, %v80_v32  ;;  %v142_v38 = vsel %vm82_vm0, %v140_v25, %v138_v24 }
  0x11   :  { %v150_v31 = vld [vmem:[#allocation0 + $0x41] ss:$8 sm:$0xf0]   ;;  %v89_v36 = vld [vmem:[#allocation0 + $0x40] ss:$8 sm:$0xf0]  }
  0x12   :  { %v127_v26 = vld [vmem:[#allocation0 + $0x42] ss:$8 sm:$0xf]   ;;  %v106_v27 = vld [vmem:[#allocation0 + $0x43] ss:$8 sm:$0xf]  }
  0x13   :  { %v131_v28 = vsel %vm82_vm0, %v129_v22, %v127_v26  ;;  %v110_v29 = vsel %vm82_vm0, %v108_v23, %v106_v27  ;;  %v148_v30 = vld [vmem:[#allocation0 + $0x41] ss:$8 sm:$0xf]   ;;  %v87_v35 = vld [vmem:[#allocation0 + $0x40] ss:$8 sm:$0xf]  }
  0x14   :  { %132 = vrot.lane.b32.xlu1 %v131_v28, %s194_s0  ;;  %111 = vrot.lane.b32.xlu0 %v110_v29, %s195_s9  ;;  %v152_v37 = vsel %vm82_vm0, %v150_v31, %v148_v30  ;;  %85 = vst.msk [vmem:[%s290_s1] sm:$0xff] %vm84_vm1, %v83_v34   ;;  %v91_v39 = vsel %vm82_vm0, %v89_v36, %v87_v35 }
  0x15   :  { %187 = vst.msk [vmem:[%s290_s1 + $0x8] sm:$0xff] %vm84_vm1, %v91_v39  }
  0x18   :  { %153 = vrot.lane.b32.xlu1 %v152_v37, %s196_s14  ;;  %143 = vrot.lane.b32.xlu0 %v142_v38, %s196_s14 }
  0x81   :  { %v123_v40 = vpop.permute.xlu1 %122   ;;  %v102_v41 = vpop.permute.xlu0 %101  }
  0x82   :  { %104 = vst.msk [vmem:[%s290_s1] sm:$0xff] %vm103_vm2, %v102_v41  }
  0x83   :  { %125 = vst.msk [vmem:[%s290_s1] sm:$0xff] %vm124_vm3, %v123_v40  }
  0x86   :  { %v133_v42 = vpop.permute.xlu1 %132   ;;  %v112_v43 = vpop.permute.xlu0 %111  }
  0x87   :  { %188 = vst.msk [vmem:[%s290_s1 + $0x8] sm:$0xff] %vm103_vm2, %v112_v43  }
  0x88   :  { %189 = vst.msk [vmem:[%s290_s1 + $0x8] sm:$0xff] %vm124_vm3, %v133_v42  }
  0x8a   :  { %v154_v44 = vpop.permute.xlu1 %153   ;;  %v144_v45 = vpop.permute.xlu0 %143  }
  0x8b   :  { %190 = vst.msk [vmem:[%s290_s1 + $0x8] sm:$0xff] %vm145_vm4, %v154_v44   ;;  %146 = vst.msk [vmem:[%s290_s1] sm:$0xff] %vm145_vm4, %v144_v45  }

// kernel: _filter_layer_impl.1
= control target key start
LH: loop header
LB: loop body
LE: loop exit
PB: predicated region body
PF: predicated region fallthrough
CT: control target
= control target key end

     0   :  { %vm35_vm0 = vcmask 64512   ;;  %v736_v3 = vmov 0.0|0.0   ;;  %vm737_vm1 = vmmov 0   ;;  %v738_v4 = vmov 0.0   ;;  %s929_s0 = inlined_call_operand.vmem [shape: f32[8,128], index: 0, kind: input, shape index: {}]   ;;  %s930_s1 = inlined_call_operand.vmem [shape: f32[16,8], index: 1, kind: input, shape index: {}]   ;;  %s931_s5 = inlined_call_operand.vmem [shape: f32[128,4], index: 5, kind: input, shape index: {}]   ;;  %s932_s3 = inlined_call_operand.vmem [shape: f32[16,128], index: 3, kind: input, shape index: {}]   ;;  %s933_s4 = inlined_call_operand.vmem [shape: f32[16,128], index: 4, kind: input, shape index: {}]   ;;  %s934_s2 = inlined_call_operand.vmem [shape: f32[8,16], index: 2, kind: input, shape index: {}]   ;;  %s935_s6 = inlined_call_operand.vmem [shape: f32[4,128], index: 6, kind: input, shape index: {}]   ;;  %s936_s7 = inlined_call_operand.vmem [shape: f32[1,128], index: 7, kind: input, shape index: {}]   ;;  %s937_s8 = inlined_call_operand.vmem [shape: f32[1,128], index: 8, kind: input, shape index: {}]   ;;  %s938_s9 = inlined_call_operand.vmem [shape: f32[8,128], index: 9, kind: output, shape index: {}]  }
   0x1   :  { %v792_v0 = vld [vmem:[%s929_s0] sm:$0xff]  ;;  %v34_v2 = vld [vmem:[%s930_s1 + $0x8] sm:$0xff]  ;;  %680 = vmatprep.subr.bf16.mxu1 %v736_v3  ;;  %597 = vmatprep.mubr.msk.f32.mxu1 %vm737_vm1, %v738_v4  ;;  %v204_v7 = vld [vmem:[%s931_s5 + $0x10] sm:$0xff]  ;;  %vm128_vm2 = vcmask 130048   ;;  %vm293_vm3 = vcmask 1043456   ;;  %vm289_vm4 = vcmask 31744  }
   0x2   :  { %v33_v1 = vld [vmem:[%s930_s1] sm:$0xff]  ;;  %588 = vmatprep.subr.mxu0 %v792_v0  ;;  %v203_v6 = vld [vmem:[%s931_s5 + $0x8] sm:$0xff]  ;;  %v205_v9 = vld [vmem:[%s931_s5 + $0x18] sm:$0xff] }
   0x3   :  { %590 = vmatprep.mubr.msk.f32.mxu0 %vm35_vm0, %v33_v1  ;;  %589 = vmatpush3.msra.mxu0 %v792_v0  ;;  %v202_v5 = vld [vmem:[%s931_s5] sm:$0xff]  ;;  %v823_v10 = vpack.c.bf16 %v205_v9, %v204_v7  ;;  %v207_v12 = vld [vmem:[%s931_s5 + $0x28] sm:$0xff]  ;;  %v208_v14 = vld [vmem:[%s931_s5 + $0x30] sm:$0xff] }
   0x4   :  { %591 = vmatmul.mubr.msk.f32.vlgmr.msra.gmra.mrb[0].mxu0 %vm35_vm0, %v34_v2  ;;  %683 = vmatprep.subr.bf16.mxu0 %v736_v3  ;;  %v817_v8 = vpack.c.bf16 %v203_v6, %v202_v5  ;;  %v206_v11 = vld [vmem:[%s931_s5 + $0x20] sm:$0xff]  ;;  %v209_v15 = vld [vmem:[%s931_s5 + $0x38] sm:$0xff]  ;;  %v211_v18 = vld [vmem:[%s931_s5 + $0x48] sm:$0xff] }
   0x5   :  { %632 = vmatprep.mubr.msk.f32.mxu0 %vm737_vm1, %v738_v4  ;;  %v833_v13 = vpack.c.bf16 %v207_v12, %v206_v11  ;;  %v843_v16 = vpack.c.bf16 %v209_v15, %v208_v14  ;;  %v210_v17 = vld [vmem:[%s931_s5 + $0x40] sm:$0xff]  ;;  %v212_v20 = vld [vmem:[%s931_s5 + $0x50] sm:$0xff]  ;;  %v213_v21 = vld [vmem:[%s931_s5 + $0x58] sm:$0xff] }
   0x6   :  { %685 = vmatpush3.bf16.msra.mxu0 %v817_v8  ;;  %v853_v19 = vpack.c.bf16 %v211_v18, %v210_v17  ;;  %v699_v22 = vpack.c.bf16 %v213_v21, %v212_v20  ;;  %v214_v23 = vld [vmem:[%s931_s5 + $0x60] sm:$0xff]  ;;  %v215_v24 = vld [vmem:[%s931_s5 + $0x68] sm:$0xff]  ;;  %v216_v40 = vld [vmem:[%s931_s5 + $0x70] sm:$0xff] }
   0x7   :  { %686 = vmatprep.subr.bf16.mxu0 %v736_v3  ;;  %v702_v25 = vpack.c.bf16 %v215_v24, %v214_v23  ;;  %v118_v26 = vld [vmem:[%s932_s3 + $0x8] sm:$0xff]  ;;  %v121_v27 = vld [vmem:[%s933_s4] sm:$0xff]  ;;  %v217_v41 = vld [vmem:[%s931_s5 + $0x78] sm:$0xff] }
   0x8   :  { %v117_v28 = vld [vmem:[%s932_s3] sm:$0xff]  ;;  %v122_v29 = vld [vmem:[%s933_s4 + $0x8] sm:$0xff]  ;;  %v705_v42 = vpack.c.bf16 %v217_v41, %v216_v40 }
   0x9   :  { %v127_v39 = vld [vmem:[%s934_s2] sm:$0xff] }
   0xa   :  { %688 = vmatpush3.bf16.msra.mxu0 %v823_v10  ;;  %v288_v43 = vld [vmem:[%s935_s6] sm:$0xf] }
   0xb   :  { %689 = vmatprep.subr.bf16.mxu0 %v736_v3  ;;  %v542_v59 = vld [vmem:[%s936_s7] ss:$0 sm:$0xff] }
   0xc   :  { %v543_v61 = vld [vmem:[%s937_s8] ss:$0 sm:$0xff] }
   0xe   :  { %691 = vmatpush3.bf16.msra.mxu0 %v833_v13 }
   0xf   :  { %692 = vmatprep.subr.bf16.mxu0 %v736_v3 }
  0x12   :  { %694 = vmatpush3.bf16.msra.mxu0 %v843_v16 }
  0x13   :  { %695 = vmatprep.subr.bf16.mxu0 %v736_v3 }
  0x16   :  { %697 = vmatpush3.bf16.msra.mxu0 %v853_v19 }
  0x17   :  { %698 = vmatprep.subr.bf16.mxu0 %v736_v3 }
  0x1a   :  { %700 = vmatpush3.bf16.msra.mxu0 %v699_v22 }
  0x1b   :  { %701 = vmatprep.subr.bf16.mxu0 %v736_v3 }
  0x1e   :  { %703 = vmatpush3.bf16.msra.mxu0 %v702_v25 }
  0x1f   :  { %704 = vmatprep.subr.bf16.mxu0 %v736_v3 }
  0x22   :  { %706 = vmatpush3.bf16.msra.mxu0 %v705_v42 }
  0x23   :  { %675 = vmatprep.subr.mxu0 %v738_v4 }
  0xd7   :  { %v592_v30 = vpop.f32.mrb[0].mxu0 }
  0xd8   :  { %v120_v31 = vmul.f32 %v592_v30, %v118_v26  ;;  %v123_v32 = vmul.f32 %v592_v30, %v121_v27  ;;  %v108_v33 = vpop.f32.mrb[1].mxu0 }
  0xd9   :  { %v119_v34 = vmul.f32 %v117_v28, %v108_v33  ;;  %v124_v35 = vmul.f32 %v122_v29, %v108_v33 }
  0xdb   :  { %v125_v36 = vadd.f32 %v123_v32, %v119_v34  ;;  %v126_v37 = vadd.f32 %v124_v35, %v120_v31 }
  0xdd   :  { %v681_v38 = vpack.c.bf16 %v126_v37, %v125_v36 }
  0xdf   :  { %682 = vmatpush3.bf16.msra.mxu1 %v681_v38 }
  0xe0   :  { %635 = vmatprep.subr.mxu1 %v738_v4 }
  0xe2   :  { %598 = vmatmul.mubr.msk.f32.vlgmr.msra.gmra.mrb[0].mxu1 %vm128_vm2, %v127_v39 }
  0xe3   :  { %637 = vmatprep.mubr.msk.f32.mxu1 %vm737_vm1, %v738_v4  ;;  %636 = vmatpush3.msk.msra.mxu1 %vm293_vm3, %v288_v43 }
  0xe4   :  { %707 = vmatprep.subr.bf16.mxu1 %v736_v3 }
 0x1b5   :  { %v198_v44 = vpop.f32.mrb[0].mxu1 }
 0x1b6   :  { %v199_v45 = vadd.f32 %v198_v44, %v792_v0  ;;  %v599_v46 = vpop.f32.mrb[1].mxu1 }
 0x1b8   :  { %633 = vmatmul.mubr.f32.vlgmr.msra.gmra.mrb[2].mxu0 %v199_v45 }
 0x1b9   :  { %676 = vmatpush3.msk.msra.mxu0 %vm293_vm3, %v288_v43  ;;  %677 = vmatprep.mubr.msk.f32.mxu0 %vm737_vm1, %v738_v4 }
 0x28b   :  { %v284_v47 = vpop.f32.mrb[2].mxu0 }
 0x28c   :  { %v634_v48 = vpop.f32.mrb[3].mxu0  ;;  %638 = vmatmul.mubr.msk.f32.vlgmr.msra.gmra.mrb[2].mxu1 %vm289_vm4, %v284_v47 }
 0x28d   :  { %709 = vmatpush3.bf16.msra.mxu1 %v817_v8  ;;  %672 = vmatprep.mubr.msk.f32.mxu1 %vm737_vm1, %v738_v4 }
 0x28e   :  { %710 = vmatprep.subr.bf16.mxu1 %v736_v3 }
 0x291   :  { %712 = vmatpush3.bf16.msra.mxu1 %v823_v10 }
 0x292   :  { %713 = vmatprep.subr.bf16.mxu1 %v736_v3 }
 0x295   :  { %715 = vmatpush3.bf16.msra.mxu1 %v833_v13 }
 0x296   :  { %716 = vmatprep.subr.bf16.mxu1 %v736_v3 }
 0x299   :  { %718 = vmatpush3.bf16.msra.mxu1 %v843_v16 }
 0x29a   :  { %719 = vmatprep.subr.bf16.mxu1 %v736_v3 }
 0x29d   :  { %721 = vmatpush3.bf16.msra.mxu1 %v853_v19 }
 0x29e   :  { %722 = vmatprep.subr.bf16.mxu1 %v736_v3 }
 0x2a1   :  { %724 = vmatpush3.bf16.msra.mxu1 %v699_v22 }
 0x2a2   :  { %725 = vmatprep.subr.bf16.mxu1 %v736_v3 }
 0x2a5   :  { %727 = vmatpush3.bf16.msra.mxu1 %v702_v25 }
 0x2a6   :  { %728 = vmatprep.subr.bf16.mxu1 %v736_v3 }
 0x2a9   :  { %730 = vmatpush3.bf16.msra.mxu1 %v705_v42 }
 0x35f   :  { %v363_v49 = vpop.f32.mrb[2].mxu1 }
 0x360   :  { %v367_v50 = vsub.f32 %v199_v45, %v363_v49  ;;  %v639_v51 = vpop.f32.mrb[3].mxu1 }
 0x362   :  { %v368_v52 = vmul.f32 %v367_v50, %v367_v50 }
 0x364   :  { %673 = vmatmul.mubr.f32.vlgmr.msra.gmra.mrb[4].mxu1 %v368_v52 }
 0x437   :  { %v435_v53 = vpop.f32.mrb[4].mxu1 }
 0x438   :  { %v674_v54 = vpop.f32.mrb[5].mxu1  ;;  %678 = vmatmul.mubr.msk.f32.vlgmr.msra.gmra.mrb[4].mxu0 %vm289_vm4, %v435_v53 }
 0x50b   :  { %v508_v55 = vpop.f32.mrb[4].mxu0 }
 0x50c   :  { %v509_v56 = vadd.f32 1e-12, %v508_v55  ;;  %v679_v57 = vpop.f32.mrb[5].mxu0 }
 0x50e   :  { %734 = vrsqrt.f32 %v509_v56 }
 0x518   :  { %v735_v58 = vpop.eup %734 }
 0x519   :  { %v513_v60 = vmul.f32 %v735_v58, %v367_v50 }
 0x51b   :  { %v521_v62 = vmul.f32 %v542_v59, %v513_v60 }
 0x51d   :  { %v529_v63 = vadd.f32 %v543_v61, %v521_v62 }
 0x51f   :  { %530 = vst [vmem:[%s938_s9] sm:$0xff] %v529_v63 }

</bundles_post_ra>
